<compile_context>
chip_gen: v7x
topology: tpu7x:2x2x1
jax: 0.10.0
libtpu: 0.0.40
codegen_flags: <defaults>
</compile_context>

<pallas_src>
import functools

import jax
import jax.numpy as jnp
from jax.experimental import pallas as pl
from jax.experimental.pallas import tpu as pltpu


def _round_up(a, b):
    return (a + b - 1) // b * b


def _make_kernel(Cp, P, H, W, KH, KW, dilation, has_act, batch_tile):
    HW = H * W

    def kernel(cmask_ref, rmask_ref, x_ref, w_ref, b_ref, o_ref):
        w = w_ref[...]                       # (P, KH*KW*Cp) bf16, BN folded
        b = b_ref[...]                       # (P, 1) f32, BN folded bias

        for bt in range(batch_tile):         # static unroll over images in block
            x = x_ref[bt].astype(jnp.float32)            # (Cp, HW) lane-dense

            # Horizontal-wrap masking hoisted onto the source: one multiply per
            # non-center kw, reused for all KH row shifts of that column tap.
            xs = []
            for kw_i in range(KW):
                dw = (kw_i - KW // 2) * dilation
                if dw == 0:
                    xs.append(x)
                else:
                    xs.append(x * cmask_ref[kw_i:kw_i + 1, :])

            # Each tap is one static XLU roll of the flat spatial axis plus a
            # row-validity mask for the vertical halo.  Taps are stacked
            # (aligned, Cp % 8 == 0) and contracted on the MXU in one matmul.
            taps = []
            for kh in range(KH):
                dh = (kh - KH // 2) * dilation
                for kw_i in range(KW):
                    dw = (kw_i - KW // 2) * dilation
                    off = dh * W + dw
                    t = xs[kw_i]
                    if off != 0:
                        t = pltpu.roll(t, shift=(-off) % HW, axis=1)
                    if dh != 0:
                        t = t * rmask_ref[kh:kh + 1, :]
                    taps.append(t)
            taps = jnp.concatenate(taps, axis=0).astype(jnp.bfloat16)

            acc = jnp.dot(w, taps, preferred_element_type=jnp.float32) + b
            if has_act:
                acc = jnp.maximum(acc, 0.0)
            o_ref[bt] = acc.astype(o_ref.dtype)

    return kernel


@functools.partial(
    jax.jit,
    static_argnames=("stride", "padding", "dilation", "groups", "has_act",
                     "eps", "batch_tile"))
def conv_bn_act_block(x, conv_w, bn_gamma, bn_beta, bn_mean, bn_var, *,
                      stride=1, padding=1, dilation=1, groups=1,
                      has_act=True, eps=1e-5, batch_tile=1):
    """ConvBnActBlock forward (eval-mode BN folded into the conv).

    x:      (N, C, H, W) float32, NCHW (PyTorch layout, kept as-is).
    conv_w: (P, C, KH, KW) float32 (torch Conv2d weight layout).
    bn_*:   (P,) BatchNorm2d eval-mode parameters / running stats.
    Returns (N, P, H, W) float32.
    """
    N, C, H, W = x.shape
    P, _, KH, KW = conv_w.shape
    if stride != 1 or groups != 1:
        # TODO(synk): stride>1 / grouped-conv ConvBnActBlock configs.
        raise NotImplementedError("only stride=1, groups=1 is implemented")
    if KH != KW or KH % 2 != 1 or padding != dilation * (KH // 2):
        # TODO(synk): non-'same' padding configs.
        raise NotImplementedError("only odd kernels with 'same' padding")
    HW = H * W
    if HW % 128 != 0:
        # TODO(synk): pad the flat spatial axis to a multiple of 128 for
        # lane-dense unmasked stores when H*W is not 128-aligned.
        raise NotImplementedError("H*W must be a multiple of 128")
    if N % batch_tile != 0:
        raise ValueError("batch_tile must divide the batch size")

    # Fold eval-mode BN into a per-output-channel scale/bias and fold the
    # scale into the conv weights (in-kernel epilogue = bias + ReLU only).
    s = bn_gamma / jnp.sqrt(bn_var + eps)
    w_fold = conv_w * s[:, None, None, None]
    b_fold = (bn_beta - bn_mean * s).reshape(P, 1).astype(jnp.float32)

    # Zero-pad input channels to a multiple of 8 so each tap slab is whole
    # sublane tiles; the matching weight columns are zero, so results are
    # unchanged (a no-op at realistic channel counts).
    Cp = _round_up(C, 8)
    w_pad = jnp.pad(w_fold, ((0, 0), (0, Cp - C), (0, 0), (0, 0)))
    # Repack to (P, KH*KW*Cp), k = (kh*KW + kw)*Cp + c, bf16 (weights only).
    wm = jnp.transpose(w_pad, (0, 2, 3, 1)).reshape(P, KH * KW * Cp)
    wm = wm.astype(jnp.bfloat16)

    # NCHW stays NCHW; flattening H,W is a free reshape of contiguous memory.
    # Activations travel as bf16 (MXU input precision; f32 accumulation).
    x_flat = jnp.pad(x, ((0, 0), (0, Cp - C), (0, 0), (0, 0)))
    x_flat = x_flat.reshape(N, Cp, HW).astype(jnp.bfloat16)

    # Grid-invariant halo masks, baked once here and passed as tiny constant
    # inputs.  cmask[kw] zeroes the source columns that would wrap
    # horizontally after the flat roll; rmask[kh] zeroes the output rows whose
    # vertical tap falls outside the image.
    ww = jnp.arange(HW, dtype=jnp.int32) % W
    hh = jnp.arange(HW, dtype=jnp.int32) // W
    cmask, rmask = [], []
    for kw_i in range(KW):
        dw = (kw_i - KW // 2) * dilation
        if dw > 0:
            m = ww >= dw
        elif dw < 0:
            m = ww < W + dw
        else:
            m = jnp.ones((HW,), jnp.bool_)
        cmask.append(m)
    for kh in range(KH):
        dh = (kh - KH // 2) * dilation
        if dh > 0:
            m = hh < H - dh
        elif dh < 0:
            m = hh >= -dh
        else:
            m = jnp.ones((HW,), jnp.bool_)
        rmask.append(m)
    cmask = jnp.stack(cmask).astype(jnp.float32)      # (KW, HW)
    rmask = jnp.stack(rmask).astype(jnp.float32)      # (KH, HW)

    kernel = _make_kernel(Cp, P, H, W, KH, KW, dilation, has_act, batch_tile)

    out_flat = pl.pallas_call(
        kernel,
        out_shape=jax.ShapeDtypeStruct((N, P, HW), x.dtype),
        grid_spec=pltpu.PrefetchScalarGridSpec(
            num_scalar_prefetch=0,
            grid=(N // batch_tile,),
            in_specs=[
                pl.BlockSpec((KW, HW), lambda n: (0, 0)),
                pl.BlockSpec((KH, HW), lambda n: (0, 0)),
                pl.BlockSpec((batch_tile, Cp, HW), lambda n: (n, 0, 0)),
                pl.BlockSpec((P, KH * KW * Cp), lambda n: (0, 0)),
                pl.BlockSpec((P, 1), lambda n: (0, 0)),
            ],
            out_specs=pl.BlockSpec((batch_tile, P, HW), lambda n: (n, 0, 0)),
        ),
        # TODO(synk): at realistic H,W add a row-tile grid axis, size blocks
        # per generation (v7x: 64 MiB VMEM, v5e/v6e: 128 MiB) via
        # vmem_limit_bytes, and bump the activation spec to
        # pipeline_mode=pl.Buffered(3) if xprof shows exposed DMA.  At this
        # toy size the default scoped VMEM limit is ample, so it is unset.
        compiler_params=pltpu.CompilerParams(
            dimension_semantics=("parallel",)),
    )(cmask, rmask, x_flat, wm, b_fold)

    return out_flat.reshape(N, P, H, W)


def _reference(x, conv_w, bn_gamma, bn_beta, bn_mean, bn_var, *,
               stride=1, padding=1, dilation=1, has_act=True, eps=1e-5,
               quantize_like_kernel=False):
    """Pure-JAX reference: Conv2d + eval-mode BN (folded) + ReLU.

    quantize_like_kernel=True rounds activations / folded weights to bf16
    first (the kernel's MXU input precision) so the tight comparison isolates
    kernel bugs from the expected bf16 rounding.
    """
    s = bn_gamma / jnp.sqrt(bn_var + eps)
    w_fold = conv_w * s[:, None, None, None]
    b_fold = bn_beta - bn_mean * s
    if quantize_like_kernel:
        x = x.astype(jnp.bfloat16).astype(jnp.float32)
        w_fold = w_fold.astype(jnp.bfloat16).astype(jnp.float32)
    y = jax.lax.conv_general_dilated(
        x, w_fold, window_strides=(stride, stride),
        padding=[(padding, padding), (padding, padding)],
        rhs_dilation=(dilation, dilation),
        dimension_numbers=("NCHW", "OIHW", "NCHW"),
        precision=jax.lax.Precision.HIGHEST)
    y = y + b_fold[None, :, None, None]
    if has_act:
        y = jnp.maximum(y, 0.0)
    return y


if __name__ == "__main__":
    # ConvBnActBlock(inplanes=4, planes=8, kernel_size=3, stride=1,
    #                padding=dilation, dilation=dilation) on a 2x4x16x16 input.
    N, C, H, W = 2, 4, 16, 16
    P = 8
    KH = KW = 3
    eps = 1e-5

    key = jax.random.PRNGKey(0)
    kx, kw, kg, kb, km, kv = jax.random.split(key, 6)
    x = jax.random.normal(kx, (N, C, H, W), jnp.float32)
    conv_w = jax.random.normal(kw, (P, C, KH, KW), jnp.float32) * 0.2
    bn_gamma = 1.0 + 0.1 * jax.random.normal(kg, (P,), jnp.float32)
    bn_beta = 0.1 * jax.random.normal(kb, (P,), jnp.float32)
    bn_mean = 0.1 * jax.random.normal(km, (P,), jnp.float32)
    bn_var = jnp.abs(jax.random.normal(kv, (P,), jnp.float32)) + 0.5

    for dilation in (1, 2):            # plain 3x3 and an ASPP-style dilated 3x3
        for batch_tile in (1, 2):      # 1: parallel batch axis (v7x, 2 TCs)
                                       # 2: one fatter block (v5e/v6e, 1 TC)
            padding = dilation         # 'same' padding, as used in DeepLabV3+
            out = conv_bn_act_block(
                x, conv_w, bn_gamma, bn_beta, bn_mean, bn_var,
                stride=1, padding=padding, dilation=dilation, groups=1,
                has_act=True, eps=eps, batch_tile=batch_tile)
            out = jax.block_until_ready(out)
            assert out.shape == (N, P, H, W), out.shape

            # Tight check: same bf16-rounded inputs, f32 accumulation.
            ref_q = _reference(x, conv_w, bn_gamma, bn_beta, bn_mean, bn_var,
                               stride=1, padding=padding, dilation=dilation,
                               has_act=True, eps=eps, quantize_like_kernel=True)
            err_q = float(jnp.max(jnp.abs(out - ref_q)))
            assert err_q < 2e-3, (dilation, batch_tile, err_q)

            # Loose check against the full-f32 module semantics (bounds the
            # bf16 MXU-input rounding introduced as a performance change).
            ref = _reference(x, conv_w, bn_gamma, bn_beta, bn_mean, bn_var,
                             stride=1, padding=padding, dilation=dilation,
                             has_act=True, eps=eps)
            err = float(jnp.max(jnp.abs(out - ref)))
            assert err < 0.25, (dilation, batch_tile, err)

    print("KERNEL_OK")
</pallas_src>

<mosaic_0001>
module attributes {stable_mosaic.version = 11 : i64} {
  func.func @kernel(%arg0: i32, %arg1: memref<3x256xf32, #tpu.memory_space<vmem>>, %arg2: memref<3x256xf32, #tpu.memory_space<vmem>>, %arg3: memref<1x8x256xbf16, #tpu.memory_space<vmem>>, %arg4: memref<8x72xbf16, #tpu.memory_space<vmem>>, %arg5: memref<8x1xf32, #tpu.memory_space<vmem>>, %arg6: memref<1x8x256xf32, #tpu.memory_space<vmem>>) attributes {dimension_semantics = [#tpu.dimension_semantics<parallel>], iteration_bounds = array<i64: 2>, scalar_prefetch = 0 : i64, scratch_operands = 0 : i64, tpu.core_type = #tpu.core_type<tc>, window_params = [{pipeline_mode = #tpu.pipeline_mode<synchronous>, transform_indices = @transform_0, window_bounds = array<i64: 3, 256>}, {pipeline_mode = #tpu.pipeline_mode<synchronous>, transform_indices = @transform_1, window_bounds = array<i64: 3, 256>}, {transform_indices = @transform_2, window_bounds = array<i64: 1, 8, 256>}, {pipeline_mode = #tpu.pipeline_mode<synchronous>, transform_indices = @transform_3, window_bounds = array<i64: 8, 72>}, {pipeline_mode = #tpu.pipeline_mode<synchronous>, transform_indices = @transform_4, window_bounds = array<i64: 8, 1>}, {transform_indices = @transform_5, window_bounds = array<i64: 1, 8, 256>}]} {
    %c0 = arith.constant 0 : index
    %c0_0 = arith.constant 0 : index
    %0 = vector.load %arg4[%c0, %c0_0] : memref<8x72xbf16, #tpu.memory_space<vmem>>, vector<8x72xbf16>
    %c0_1 = arith.constant 0 : index
    %c0_2 = arith.constant 0 : index
    %1 = vector.load %arg5[%c0_1, %c0_2] : memref<8x1xf32, #tpu.memory_space<vmem>>, vector<8x1xf32>
    %c0_3 = arith.constant 0 : index
    %c0_4 = arith.constant 0 : index
    %c0_5 = arith.constant 0 : index
    %2 = vector.load %arg3[%c0_3, %c0_4, %c0_5] : memref<1x8x256xbf16, #tpu.memory_space<vmem>>, vector<1x8x256xbf16>
    %3 = vector.shape_cast %2 : vector<1x8x256xbf16> to vector<8x256xbf16>
    %4 = arith.extf %3 : vector<8x256xbf16> to vector<8x256xf32>
    %c0_6 = arith.constant 0 : index
    %c0_7 = arith.constant 0 : index
    %5 = vector.load %arg1[%c0_6, %c0_7] : memref<3x256xf32, #tpu.memory_space<vmem>>, vector<1x256xf32>
    %6 = vector.broadcast %5 : vector<1x256xf32> to vector<8x256xf32>
    %7 = arith.mulf %4, %6 : vector<8x256xf32>
    %c2 = arith.constant 2 : index
    %c0_8 = arith.constant 0 : index
    %8 = vector.load %arg1[%c2, %c0_8] : memref<3x256xf32, #tpu.memory_space<vmem>>, vector<1x256xf32>
    %9 = vector.broadcast %8 : vector<1x256xf32> to vector<8x256xf32>
    %10 = arith.mulf %4, %9 : vector<8x256xf32>
    %c17_i32 = arith.constant 17 : i32
    %11 = tpu.dynamic_rotate %7 by %c17_i32 dim 1 : vector<8x256xf32>, i32 -> vector<8x256xf32>
    %c0_9 = arith.constant 0 : index
    %c0_10 = arith.constant 0 : index
    %12 = vector.load %arg2[%c0_9, %c0_10] : memref<3x256xf32, #tpu.memory_space<vmem>>, vector<1x256xf32>
    %13 = vector.broadcast %12 : vector<1x256xf32> to vector<8x256xf32>
    %14 = arith.mulf %11, %13 : vector<8x256xf32>
    %c16_i32 = arith.constant 16 : i32
    %15 = tpu.dynamic_rotate %4 by %c16_i32 dim 1 : vector<8x256xf32>, i32 -> vector<8x256xf32>
    %c0_11 = arith.constant 0 : index
    %c0_12 = arith.constant 0 : index
    %16 = vector.load %arg2[%c0_11, %c0_12] : memref<3x256xf32, #tpu.memory_space<vmem>>, vector<1x256xf32>
    %17 = vector.broadcast %16 : vector<1x256xf32> to vector<8x256xf32>
    %18 = arith.mulf %15, %17 : vector<8x256xf32>
    %c15_i32 = arith.constant 15 : i32
    %19 = tpu.dynamic_rotate %10 by %c15_i32 dim 1 : vector<8x256xf32>, i32 -> vector<8x256xf32>
    %c0_13 = arith.constant 0 : index
    %c0_14 = arith.constant 0 : index
    %20 = vector.load %arg2[%c0_13, %c0_14] : memref<3x256xf32, #tpu.memory_space<vmem>>, vector<1x256xf32>
    %21 = vector.broadcast %20 : vector<1x256xf32> to vector<8x256xf32>
    %22 = arith.mulf %19, %21 : vector<8x256xf32>
    %c1_i32 = arith.constant 1 : i32
    %23 = tpu.dynamic_rotate %7 by %c1_i32 dim 1 : vector<8x256xf32>, i32 -> vector<8x256xf32>
    %c255_i32 = arith.constant 255 : i32
    %24 = tpu.dynamic_rotate %10 by %c255_i32 dim 1 : vector<8x256xf32>, i32 -> vector<8x256xf32>
    %c241_i32 = arith.constant 241 : i32
    %25 = tpu.dynamic_rotate %7 by %c241_i32 dim 1 : vector<8x256xf32>, i32 -> vector<8x256xf32>
    %c2_15 = arith.constant 2 : index
    %c0_16 = arith.constant 0 : index
    %26 = vector.load %arg2[%c2_15, %c0_16] : memref<3x256xf32, #tpu.memory_space<vmem>>, vector<1x256xf32>
    %27 = vector.broadcast %26 : vector<1x256xf32> to vector<8x256xf32>
    %28 = arith.mulf %25, %27 : vector<8x256xf32>
    %c240_i32 = arith.constant 240 : i32
    %29 = tpu.dynamic_rotate %4 by %c240_i32 dim 1 : vector<8x256xf32>, i32 -> vector<8x256xf32>
    %c2_17 = arith.constant 2 : index
    %c0_18 = arith.constant 0 : index
    %30 = vector.load %arg2[%c2_17, %c0_18] : memref<3x256xf32, #tpu.memory_space<vmem>>, vector<1x256xf32>
    %31 = vector.broadcast %30 : vector<1x256xf32> to vector<8x256xf32>
    %32 = arith.mulf %29, %31 : vector<8x256xf32>
    %c239_i32 = arith.constant 239 : i32
    %33 = tpu.dynamic_rotate %10 by %c239_i32 dim 1 : vector<8x256xf32>, i32 -> vector<8x256xf32>
    %c2_19 = arith.constant 2 : index
    %c0_20 = arith.constant 0 : index
    %34 = vector.load %arg2[%c2_19, %c0_20] : memref<3x256xf32, #tpu.memory_space<vmem>>, vector<1x256xf32>
    %35 = vector.broadcast %34 : vector<1x256xf32> to vector<8x256xf32>
    %36 = arith.mulf %33, %35 : vector<8x256xf32>
    %37 = tpu.concatenate %14, %18, %22, %23, %4, %24, %28, %32, %36 in 0 : vector<8x256xf32>, vector<8x256xf32>, vector<8x256xf32>, vector<8x256xf32>, vector<8x256xf32>, vector<8x256xf32>, vector<8x256xf32>, vector<8x256xf32>, vector<8x256xf32> -> vector<72x256xf32>
    %38 = arith.truncf %37 : vector<72x256xf32> to vector<72x256xbf16>
    %cst = arith.constant dense<0.000000e+00> : vector<8x256xf32>
    %39 = tpu.matmul %0, %38, %cst {dimension_numbers = #tpu.dot_dimension_numbers<[1], [0], [0], [1], [0, 0, 1, 1], [], []>} : vector<8x72xbf16>, vector<72x256xbf16>, vector<8x256xf32> -> vector<8x256xf32>
    %40 = vector.broadcast %1 : vector<8x1xf32> to vector<8x256xf32>
    %41 = arith.addf %39, %40 : vector<8x256xf32>
    %cst_21 = arith.constant 0.000000e+00 : f32
    %42 = vector.broadcast %cst_21 : f32 to vector<8x256xf32>
    %43 = arith.maximumf %41, %42 : vector<8x256xf32>
    %c0_22 = arith.constant 0 : index
    %c0_23 = arith.constant 0 : index
    %c0_24 = arith.constant 0 : index
    %44 = vector.load %arg6[%c0_22, %c0_23, %c0_24] : memref<1x8x256xf32, #tpu.memory_space<vmem>>, vector<1x8x256xf32>
    %45 = vector.shape_cast %44 : vector<1x8x256xf32> to vector<8x256xf32>
    %46 = vector.shape_cast %43 : vector<8x256xf32> to vector<1x8x256xf32>
    tpu.vector_store %arg6[%c0_22, %c0_23, %c0_24], %46 {strides = array<i32>} : memref<1x8x256xf32, #tpu.memory_space<vmem>>, vector<1x8x256xf32>,
    return
  }
  func.func @transform_0(%arg0: i32) -> (i32, i32) {
    %c0_i32 = arith.constant 0 : i32
    %c0_i32_0 = arith.constant 0 : i32
    %c0_i32_1 = arith.constant 0 : i32
    return %c0_i32, %c0_i32_0 : i32, i32
  }
  func.func @transform_1(%arg0: i32) -> (i32, i32) {
    %c0_i32 = arith.constant 0 : i32
    %c0_i32_0 = arith.constant 0 : i32
    %c0_i32_1 = arith.constant 0 : i32
    return %c0_i32, %c0_i32_0 : i32, i32
  }
  func.func @transform_2(%arg0: i32) -> (i32, i32, i32) {
    %c0_i32 = arith.constant 0 : i32
    %c0_i32_0 = arith.constant 0 : i32
    %c0_i32_1 = arith.constant 0 : i32
    return %arg0, %c0_i32, %c0_i32_0 : i32, i32, i32
  }
  func.func @transform_3(%arg0: i32) -> (i32, i32) {
    %c0_i32 = arith.constant 0 : i32
    %c0_i32_0 = arith.constant 0 : i32
    %c0_i32_1 = arith.constant 0 : i32
    return %c0_i32, %c0_i32_0 : i32, i32
  }
  func.func @transform_4(%arg0: i32) -> (i32, i32) {
    %c0_i32 = arith.constant 0 : i32
    %c0_i32_0 = arith.constant 0 : i32
    %c0_i32_1 = arith.constant 0 : i32
    return %c0_i32, %c0_i32_0 : i32, i32
  }
  func.func @transform_5(%arg0: i32) -> (i32, i32, i32) {
    %c0_i32 = arith.constant 0 : i32
    %c0_i32_0 = arith.constant 0 : i32
    %c0_i32_1 = arith.constant 0 : i32
    return %arg0, %c0_i32, %c0_i32_0 : i32, i32, i32
  }
}

</mosaic_0001>

<bundles_post_ra>
// kernel: conv_bn_act_block.1
= control target key start
LH: loop header
LB: loop body
LE: loop exit
PB: predicated region body
PF: predicated region fallthrough
CT: control target
= control target key end

     0   :  { %s583_s18 = smov 0   ;;  %s656_s0 = inlined_call_operand.vmem [shape: f32[3,256], index: 0, kind: input, shape index: {}]   ;;  %s657_s1 = inlined_call_operand.vmem [shape: f32[3,256], index: 1, kind: input, shape index: {}]   ;;  %s658_s2 = inlined_call_operand.vmem [shape: bf16[2,8,256], index: 2, kind: input, shape index: {}]   ;;  %s659_s3 = inlined_call_operand.vmem [shape: bf16[8,72], index: 3, kind: input, shape index: {}]   ;;  %s660_s4 = inlined_call_operand.vmem [shape: f32[8,1], index: 4, kind: input, shape index: {}]   ;;  %s661_s5 = inlined_call_operand.vmem [shape: f32[2,8,256], index: 5, kind: output, shape index: {}]  }
   0x1 LB: > { %s481_s19 = sadd.s32 4294967295, %s542_s18   ;;  %p485_p0 = scmp.ge.s32.totalorder %s542_s18, 1  ;;  %s542_s18 = sphi %s583_s18, %s15_s18  }
   0x2   : > { %p187_p1 = scmp.lt.s32.totalorder %s542_s18, 3 }
   0x4   : > { %p188_p2 = pnand %p485_p0, %p187_p1 }
   0x5   : > { %p215_p3 = scmp.lt.s32.totalorder (!%p188_p2), %s481_s19, 1  ;;  %v233_v0 = vlaneseq (!%p188_p2)  ;;  %v231_v2 = vld [vmem:[%s656_s0] ss:$4 sm:$0x3] (!%p188_p2)  ;;  %s544_s28 = smov (!%p188_p2), 16   ;;  %v551_v20 = vmov (!%p188_p2), 0  }
   0x6   : > { %191 = sbr.rel (%p188_p2) target bundleno = 385 (0x181), region = 40  ;;  %v490_v4 = vld [vmem:[%s656_s0 + $0x2] ss:$4 sm:$0x3] (!%p188_p2)  ;;  %s545_s29 = smov (!%p188_p2), 17   ;;  %413 = vmatprep.mubr.bf16.mxu0 (!%p188_p2), %v551_v20  ;;  %535 = vset.pattern.permute.xlu0 (!%p188_p2), %v551_v20  ;;  %vm374_vm8 = vcmask (!%p188_p2), 1043456  }
   0x7   : > { %v234_v1 = vshrl.u32 (!%p188_p2), %v233_v0, 7  ;;  %s546_s30 = smov (!%p188_p2), 15   ;;  %s547_s6 = smov (!%p188_p2), 1   ;;  %v227_v21 = vld [vmem:[%s660_s4] sm:$0xff] (!%p188_p2)  ;;  %v624_v22 = vand.u32 (!%p188_p2), 127, %v233_v0  ;;  %vm370_vm9 = vcmask (!%p188_p2), 588800  }
   0x8   : > { %s548_s7 = smov (!%p188_p2), 113   ;;  %s549_s8 = smov (!%p188_p2), 127   ;;  %v269_v23 = vld [vmem:[%s657_s1] ss:$4 sm:$0x3] (!%p188_p2) }
   0x9   : > { %v597_v3 = vsub.s32 (!%p188_p2), 0, %v234_v1  ;;  %v602_v5 = vsub.s32 (!%p188_p2), 1, %v234_v1  ;;  %s550_s9 = smov (!%p188_p2), 112   ;;  %s552_s10 = smov (!%p188_p2), 111   ;;  %vm287_vm0 = vcmp.lt.s32.totalorder (!%p188_p2), %v624_v22, 16  ;;  %vm266_vm1 = vcmp.lt.s32.totalorder (!%p188_p2), %v624_v22, 17 }
   0xa   : > { %vm296_vm2 = vcmp.lt.s32.totalorder (!%p188_p2), %v624_v22, 15  ;;  %vm305_vm3 = vcmp.lt.s32.totalorder (!%p188_p2), %v624_v22, 1  ;;  %v491_v52 = vld [vmem:[%s657_s1 + $0x2] ss:$4 sm:$0x3] (!%p188_p2)  ;;  %vm312_vm4 = vcmp.lt.s32.totalorder (!%p188_p2), %v624_v22, 127 }
   0xb   : > { %v236_v7 = vrot.slane (!%p188_p2), %v231_v2, %v597_v3  ;;  %v251_v10 = vrot.slane (!%p188_p2), %v490_v4, %v597_v3  ;;  %v240_v11 = vrot.slane (!%p188_p2), %v231_v2, %v602_v5  ;;  %v255_v16 = vrot.slane (!%p188_p2), %v490_v4, %v602_v5 }
   0xc   : > { %v274_v26 = vrot.slane (!%p188_p2), %v269_v23, %v597_v3  ;;  %v278_v27 = vrot.slane (!%p188_p2), %v269_v23, %v602_v5  ;;  %vm319_vm5 = vcmp.lt.s32.totalorder (!%p188_p2), %v624_v22, 113  ;;  %v328_v59 = vrot.slane (!%p188_p2), %v491_v52, %v597_v3 }
   0xd   : > { %s663_s19 = smov (!%p215_p3, %s481_s19), 1  ;;  %v332_v60 = vrot.slane %v491_v52, %v602_v5  ;;  %vm341_vm6 = vcmp.lt.s32.totalorder %v624_v22, 112  ;;  %vm350_vm7 = vcmp.lt.s32.totalorder %v624_v22, 111 }
   0xe   : > { %s496_s22 = sshll.u32 %s663_s19, 3  ;;  %s497_s21 = sshll.u32 %s663_s19, 4 }
   0xf   : > { %s219_s27 = scalar_lea.vmem %s658_s2, %s496_s22  ;;  %s224_s24 = scalar_lea.vmem %s661_s5, %s497_s21 }
  0x10   : > { %v228_v6 = vld [vmem:[%s219_s27] sm:$0xff] }
  0x11   : > { %v608_v8 = vunpack.c.l.bf16 %v228_v6  ;;  %v610_v9 = vunpack.c.h.bf16 %v228_v6 }
  0x13   : > { %v515_v12 = vpack.i.bf16 %v610_v9, %v608_v8  ;;  %v243_v13 = vmul.f32 %v236_v7, %v608_v8  ;;  %v258_v14 = vmul.f32 %v251_v10, %v608_v8  ;;  %v244_v15 = vmul.f32 %v240_v11, %v610_v9 }
  0x14   : > { %v259_v18 = vmul.f32 %v255_v16, %v610_v9 }
  0x15   : > { %516 = vrot.lane.b32.xlu1 %v515_v12, %s544_s28  ;;  %260 = vrot.lane.b32.xlu0 %v243_v13, %s545_s29  ;;  %v520_v17 = vpack.i.bf16 %v244_v15, %v243_v13 }
  0x16   : > { %v525_v19 = vpack.i.bf16 %v259_v18, %v258_v14 }
  0x19   : > { %292 = vrot.lane.b32.xlu1 %v258_v14, %s546_s30  ;;  %262 = vrot.lane.b32.xlu0 %v244_v15, %s545_s29 }
  0x1d   : > { %521 = vrot.lane.b32.xlu1 %v520_v17, %s547_s6  ;;  %294 = vrot.lane.b32.xlu0 %v259_v18, %s546_s30 }
  0x21   : > { %315 = vrot.lane.b32.xlu1 %v243_v13, %s548_s7  ;;  %526 = vrot.lane.b32.xlu0 %v525_v19, %s549_s8 }
  0x25   : > { %531 = vrot.lane.b32.xlu1 %v515_v12, %s550_s9  ;;  %317 = vrot.lane.b32.xlu0 %v244_v15, %s548_s7 }
  0x29   : > { %348 = vrot.lane.b32.xlu1 %v259_v18, %s552_s10  ;;  %346 = vrot.lane.b32.xlu0 %v258_v14, %s552_s10 }
  0x2d   : > { %367 = vperm.xlu0 %535, %v227_v21  }
  0x87   : > { %v517_v24 = vpop.permute.xlu1 %516  ;;  %v261_v25 = vpop.permute.xlu0 %260 }
  0x88   : > { %v519_v28 = vunpack.i.h.bf16 %v517_v24  ;;  %v518_v29 = vunpack.i.l.bf16 %v517_v24  ;;  %v226_v24 = vld [vmem:[%s659_s3] sm:$0xf] }
  0x8a   : > { %v288_v30 = vsel %vm287_vm0, %v518_v29, %v519_v28  ;;  %v289_v31 = vsel %vm287_vm0, %v519_v28, %v518_v29 }
  0x8b   : > { %v293_v32 = vpop.permute.xlu1 %292  ;;  %v263_v33 = vpop.permute.xlu0 %262  ;;  %v291_v34 = vmul.f32 %v288_v30, %v278_v27  ;;  %v290_v35 = vmul.f32 %v289_v31, %v274_v26 }
  0x8c   : > { %v267_v36 = vsel %vm266_vm1, %v261_v25, %v263_v33  ;;  %v268_v37 = vsel %vm266_vm1, %v263_v33, %v261_v25 }
  0x8d   : > { %v281_v38 = vmul.f32 %v274_v26, %v268_v37  ;;  %v282_v39 = vmul.f32 %v278_v27, %v267_v36 }
  0x8f   : > { %v522_v40 = vpop.permute.xlu1 %521  ;;  %v295_v41 = vpop.permute.xlu0 %294  ;;  %v356_v42 = vpack.c.bf16 %v291_v34, %v282_v39  ;;  %v355_v43 = vpack.c.bf16 %v290_v35, %v281_v38 }
  0x90   : > { %v524_v44 = vunpack.i.h.bf16 %v522_v40  ;;  %v523_v45 = vunpack.i.l.bf16 %v522_v40  ;;  %v297_v46 = vsel %vm296_vm2, %v293_v32, %v295_v41  ;;  %v298_v47 = vsel %vm296_vm2, %v295_v41, %v293_v32 }
  0x91   : > { %v299_v48 = vmul.f32 %v298_v47, %v274_v26  ;;  %v300_v49 = vmul.f32 %v297_v46, %v278_v27  ;;  %381 = vmatprep.subr.bf16.mxu0 %v356_v42 }
  0x92   : > { %382 = vmatpush1.bf16.msra.mxu0 %v355_v43  ;;  %v306_v50 = vsel %vm305_vm3, %v523_v45, %v524_v44  ;;  %v307_v51 = vsel %vm305_vm3, %v524_v44, %v523_v45 }
  0x93   : > { %v316_v53 = vpop.permute.xlu1 %315  ;;  %v527_v54 = vpop.permute.xlu0 %526  ;;  %v358_v55 = vpack.c.bf16 %v306_v50, %v300_v49  ;;  %v357_v56 = vpack.c.bf16 %v307_v51, %v299_v48 }
  0x94   : > { %v529_v57 = vunpack.i.h.bf16 %v527_v54  ;;  %v528_v58 = vunpack.i.l.bf16 %v527_v54 }
  0x95   : > { %383 = vmatprep.subr.bf16.mxu0 %v358_v55 }
  0x96   : > { %384 = vmatpush1.bf16.msra.mxu0 %v357_v56  ;;  %v314_v61 = vsel %vm312_vm4, %v529_v57, %v528_v58  ;;  %v313_v62 = vsel %vm312_vm4, %v528_v58, %v529_v57 }
  0x97   : > { %v532_v63 = vpop.permute.xlu1 %531  ;;  %v318_v0 = vpop.permute.xlu0 %317  ;;  %v360_v1 = vpack.c.bf16 %v314_v61, %v610_v9  ;;  %v359_v2 = vpack.c.bf16 %v313_v62, %v608_v8 }
  0x98   : > { %v534_v4 = vunpack.i.h.bf16 %v532_v63  ;;  %v533_v6 = vunpack.i.l.bf16 %v532_v63  ;;  %v320_v7 = vsel %vm319_vm5, %v316_v53, %v318_v0  ;;  %v321_v10 = vsel %vm319_vm5, %v318_v0, %v316_v53 }
  0x99   : > { %v335_v11 = vmul.f32 %v328_v59, %v320_v7  ;;  %v336_v12 = vmul.f32 %v332_v60, %v321_v10  ;;  %385 = vmatprep.subr.bf16.mxu0 %v360_v1 }
  0x9a   : > { %v342_v3 = vsel %vm341_vm6, %v533_v6, %v534_v4  ;;  %v343_v5 = vsel %vm341_vm6, %v534_v4, %v533_v6  ;;  %386 = vmatpush1.bf16.msra.mxu0 %v359_v2 }
  0x9b   : > { %v349_v13 = vpop.permute.xlu1 %348  ;;  %v347_v14 = vpop.permute.xlu0 %346  ;;  %v345_v15 = vmul.f32 %v343_v5, %v332_v60  ;;  %v344_v16 = vmul.f32 %v342_v3, %v328_v59 }
  0x9c   : > { %v351_v17 = vsel %vm350_vm7, %v347_v14, %v349_v13  ;;  %v352_v9 = vsel %vm350_vm7, %v349_v13, %v347_v14 }
  0x9d   : > { %v353_v18 = vmul.f32 %v351_v17, %v328_v59  ;;  %v354_v8 = vmul.f32 %v352_v9, %v332_v60  ;;  %v362_v19 = vpack.c.bf16 %v345_v15, %v336_v12  ;;  %v361_v20 = vpack.c.bf16 %v344_v16, %v335_v11 }
  0x9f   : > { %v363_v21 = vpack.c.bf16 %v353_v18, %v353_v18  ;;  %v364_v23 = vpack.c.bf16 %v354_v8, %v354_v8  ;;  %387 = vmatprep.subr.bf16.mxu0 %v362_v19 }
  0xa0   : > { %388 = vmatpush1.bf16.msra.mxu0 %v361_v20 }
  0xa1   : > { %492 = vmatprep.subr.msk.bf16.mxu0 %vm374_vm8, %v364_v23  ;;  %v376_v22 = vsel %vm374_vm8, %v363_v21, 0 }
  0xa4   : > { %390 = vmatpush1.bf16.msra.mxu0 %v376_v22 }
  0xa7   : > { %493 = vmatmul.mubr.msk.bf16.vlgmr.msra.gmra.mrb[0].mxu0 %vm370_vm9, %v226_v24 }
  0xac   : > { %v368_v25 = vpop.permute.xlu0 %367 }
 0x17a   : > { %v415_v26 = vpop.f32.mrb[0].mxu0 }
 0x17b   : > { %v416_v27 = vadd.f32 %v415_v26, %v368_v25  ;;  %v417_v28 = vpop.f32.mrb[1].mxu0 }
 0x17c   : > { %v418_v29 = vadd.f32 %v417_v28, %v368_v25  ;;  %v419_v30 = vpop.f32.mrb[2].mxu0 }
 0x17d   : > { %v422_v31 = vmax.f32 %v416_v27, 0.0  ;;  %v420_v32 = vpop.f32.mrb[3].mxu0 }
 0x17e   : > { %v423_v33 = vmax.f32 %v418_v29, 0.0 }
 0x17f   : > { %424 = vst [vmem:[%s224_s24] sm:$0xff] %v422_v31 }
 0x180   : > { %425 = vst [vmem:[%s224_s24 + $0x8] sm:$0xff] %v423_v33 }
 0x181 PF: > { %s15_s18 = sadd.s32 1, %s542_s18  }
 0x182   : > { %p12_p4 = scmp.ge.s32.totalorder %s15_s18, 4  }
 0x184   :  { %14 = sbr.rel (!%p12_p4) target bundleno = 1 (0x1), region = 72 }

</bundles_post_ra>
